<compile_context>
chip_gen: v6e
topology: v6e:2x2x1
jax: 0.10.0
libtpu: 0.0.40
codegen_flags: <defaults>
</compile_context>

<pallas_src>
import functools

import jax
import jax.numpy as jnp
import numpy as np
from jax.experimental import pallas as pl
from jax.experimental.pallas import tpu as pltpu


# Default batch tile: 128 rows fully feed a 128x128 MXU plane on v5e and give
# ~128 MACs per weight push on v6e/v7x.  Clamped to the 8-padded batch below.
TILE_B = 128
_LANE = 128
_SUBLANE = 8


def _round_up(x, m):
    return (x + m - 1) // m * m


def cbow_kernel(idx_ref, emb_ref, w_ref, b_ref, out_ref, *, ctx_len):
    """CBOW forward for one batch tile.

    idx_ref : SMEM (B_pad*C,)    int32  (scalar prefetch)
    emb_ref : VMEM (V, D_pad)    f32    (embedding table, D zero-padded)
    w_ref   : VMEM (D_pad, V_pad) bf16  (pre-transposed, zero-padded)
    b_ref   : VMEM (1, V_pad)    f32    (padded lanes = -inf)
    out_ref : VMEM (tB, V_pad)   f32
    """
    tB = out_ref.shape[0]
    tile = pl.program_id(0)
    max_row = emb_ref.shape[0] - 1

    # ---- Embedding lookup + context sum: scalar-addressed row gather. ----
    # Addresses come from SMEM (scalar unit); each lookup is a lane-dense
    # (1, D_pad) dynamic row slice.  Per-row sums stay in vregs (no scratch
    # VMEM round-trip) and are stacked once before the matmul.
    rows = []
    for b in range(tB):
        base = (tile * tB + b) * ctx_len
        row = None
        for c in range(ctx_len):
            # Clamp: VMEM dynamic slices have no runtime bounds check; an OOB
            # token id would silently read into the W / bias allocations.
            tok = jnp.minimum(jnp.maximum(idx_ref[base + c], 0), max_row)
            r = emb_ref[pl.ds(tok, 1), :]                 # (1, D_pad) f32
            row = r if row is None else row + r
        rows.append(row)
    summed = jnp.concatenate(rows, axis=0)                # (tB, D_pad) f32

    # ---- Linear layer on the MXU: bf16 operands, f32 accumulation. ----
    logits = jnp.dot(summed.astype(jnp.bfloat16), w_ref[...],
                     preferred_element_type=jnp.float32) + b_ref[...]
    # padded vocab lanes: 0 (zero W columns) + (-inf) bias = -inf -> exp == 0

    # ---- Numerically stable log-softmax over the (padded) vocab, in f32. ----
    # TODO(synk): on v6e/v7x at large V, if the single EUP port binds before
    # the MXU, compute exp on bf16 inputs (shifted <= 0, so bf16 is safe).
    m = jnp.max(logits, axis=1, keepdims=True)            # finite (real cols)
    shifted = logits - m
    lse = jnp.log(jnp.sum(jnp.exp(shifted), axis=1, keepdims=True))
    out_ref[...] = (shifted - lse).astype(out_ref.dtype)


def prepare_params(embedding_table, linear_weight, linear_bias):
    """One-time parameter prep (do at init, NOT per forward step):
       - embedding table -> (V, D_pad) f32, D zero-padded to a multiple of 128,
       - W -> (D_pad, V_pad) bf16, both axes zero-padded,
       - bias -> (1, V_pad) f32 with padded lanes driven to -inf.
    """
    V, D = embedding_table.shape
    V_pad = _round_up(V, _LANE)
    D_pad = _round_up(D, _LANE)

    emb = jnp.zeros((V, D_pad), jnp.float32)
    emb = emb.at[:, :D].set(embedding_table.astype(jnp.float32))

    w_t = jnp.zeros((D_pad, V_pad), jnp.bfloat16)
    w_t = w_t.at[:D, :V].set(jnp.transpose(linear_weight).astype(jnp.bfloat16))

    b_pad = jnp.full((1, V_pad), -jnp.inf, dtype=jnp.float32)
    b_pad = b_pad.at[0, :V].set(linear_bias.astype(jnp.float32))
    return emb, w_t, b_pad


def cbow_forward(indices, emb, w_t, b_pad):
    """indices: (B, C) int; emb: (V, D_pad) f32; w_t: (D_pad, V_pad) bf16;
    b_pad: (1, V_pad) f32.  Returns log_probs (B, V) f32 (V = true vocab)."""
    B, C = indices.shape
    V, D_pad = emb.shape
    V_pad = w_t.shape[1]

    # Clamp the batch tile to the sublane-padded batch so tiny batches are not
    # blown up to a full 128-row tile of wasted MXU/EUP/HBM work.
    tB = min(TILE_B, _round_up(B, _SUBLANE))
    B_pad = _round_up(B, tB)
    # NOTE(v7x megacore): with realistic batches grid = B_pad // tB >= 2 so
    # both TensorCores get work; at the demo batch there is a single step.

    idx = jnp.zeros((B_pad, C), jnp.int32).at[:B, :].set(
        indices.astype(jnp.int32))
    idx_flat = idx.reshape(-1)                            # 1-D SMEM-friendly

    # Resident VMEM: single-buffered emb/W/bias + double-buffered output tile.
    resident = (emb.size * emb.dtype.itemsize
                + w_t.size * w_t.dtype.itemsize
                + b_pad.size * b_pad.dtype.itemsize
                + 2 * tB * V_pad * 4)
    vmem_limit = int(max(32 << 20, min(64 << 20, resident + (8 << 20))))

    grid_spec = pltpu.PrefetchScalarGridSpec(
        num_scalar_prefetch=1,
        grid=(B_pad // tB,),
        in_specs=[
            # Grid-invariant blocks: single-buffer to halve their VMEM cost.
            pl.BlockSpec((V, D_pad), lambda i, idx: (0, 0),
                         pipeline_mode=pl.Buffered(1)),
            pl.BlockSpec((D_pad, V_pad), lambda i, idx: (0, 0),
                         pipeline_mode=pl.Buffered(1)),
            pl.BlockSpec((1, V_pad), lambda i, idx: (0, 0),
                         pipeline_mode=pl.Buffered(1)),
        ],
        out_specs=pl.BlockSpec((tB, V_pad), lambda i, idx: (i, 0)),
    )

    out = pl.pallas_call(
        functools.partial(cbow_kernel, ctx_len=C),
        out_shape=jax.ShapeDtypeStruct((B_pad, V_pad), jnp.float32),
        grid_spec=grid_spec,
        compiler_params=pltpu.CompilerParams(
            dimension_semantics=("parallel",),
            vmem_limit_bytes=vmem_limit),
    )(idx_flat, emb, w_t, b_pad)

    if B_pad == B and V_pad == V:
        return out                                        # no extra HBM pass
    return out[:B, :V]


def cbow_reference_bf16(indices, embedding_table, linear_weight, linear_bias):
    """Reference with the same precision policy as the kernel (bf16 matmul
    operands, f32 accumulation / softmax)."""
    embeds = jnp.sum(embedding_table[indices], axis=1)           # (B, D) f32
    logits = jnp.dot(embeds.astype(jnp.bfloat16),
                     linear_weight.T.astype(jnp.bfloat16),
                     preferred_element_type=jnp.float32) + linear_bias
    return jax.nn.log_softmax(logits, axis=1)


def cbow_reference_f32(indices, embedding_table, linear_weight, linear_bias):
    embeds = jnp.sum(embedding_table[indices], axis=1)
    logits = embeds @ linear_weight.T + linear_bias
    return jax.nn.log_softmax(logits, axis=1)


if __name__ == "__main__":
    vocab_size = 64
    embedding_dim = 32
    window_size = 2
    context_len = 2 * window_size
    batch = 8

    key = jax.random.PRNGKey(0)
    k_idx, k_emb, k_w, k_b = jax.random.split(key, 4)

    # Deterministic inputs / params (shapes follow the PyTorch module).
    indices = jax.random.randint(k_idx, (batch, context_len), 0, vocab_size,
                                 dtype=jnp.int32)
    emb = jax.random.normal(k_emb, (vocab_size, embedding_dim),
                            dtype=jnp.float32)                  # nn.Embedding
    bound = 1.0 / np.sqrt(embedding_dim)
    w = jax.random.uniform(k_w, (vocab_size, embedding_dim),
                           minval=-bound, maxval=bound, dtype=jnp.float32)
    b = jax.random.uniform(k_b, (vocab_size,),
                           minval=-bound, maxval=bound, dtype=jnp.float32)

    # One-time weight prep, then the Pallas forward.
    emb_p, w_t, b_pad = prepare_params(emb, w, b)
    log_probs = cbow_forward(indices, emb_p, w_t, b_pad)
    jax.block_until_ready(log_probs)

    # Tight check against a precision-matched reference ...
    ref_bf16 = cbow_reference_bf16(indices, emb, w, b)
    np.testing.assert_allclose(np.asarray(log_probs), np.asarray(ref_bf16),
                               rtol=1e-3, atol=1e-3)
    # ... and a loose check against the pure-f32 PyTorch-equivalent math.
    ref_f32 = cbow_reference_f32(indices, emb, w, b)
    np.testing.assert_allclose(np.asarray(log_probs), np.asarray(ref_f32),
                               rtol=5e-2, atol=5e-2)
    print("KERNEL_OK")
</pallas_src>

<mosaic_0001>
module attributes {stable_mosaic.version = 11 : i64} {
  func.func @cbow_kernel(%arg0: i32, %arg1: memref<32xi32, #tpu.memory_space<smem>>, %arg2: memref<64x128xf32, #tpu.memory_space<vmem>>, %arg3: memref<128x128xbf16, #tpu.memory_space<vmem>>, %arg4: memref<1x128xf32, #tpu.memory_space<vmem>>, %arg5: memref<8x128xf32, #tpu.memory_space<vmem>>) attributes {dimension_semantics = [#tpu.dimension_semantics<parallel>], iteration_bounds = array<i64: 1>, scalar_prefetch = 1 : i64, scratch_operands = 0 : i64, tpu.core_type = #tpu.core_type<tc>, window_params = [{pipeline_mode = #tpu.pipeline_mode<synchronous>, transform_indices = @transform_0, window_bounds = array<i64: 64, 128>}, {pipeline_mode = #tpu.pipeline_mode<synchronous>, transform_indices = @transform_1, window_bounds = array<i64: 128, 128>}, {pipeline_mode = #tpu.pipeline_mode<synchronous>, transform_indices = @transform_2, window_bounds = array<i64: 1, 128>}, {transform_indices = @transform_3, window_bounds = array<i64: 8, 128>}]} {
    %c8_i32 = arith.constant 8 : i32
    %0 = arith.muli %arg0, %c8_i32 : i32
    %c0_i32 = arith.constant 0 : i32
    %1 = arith.addi %0, %c0_i32 : i32
    %c4_i32 = arith.constant 4 : i32
    %2 = arith.muli %1, %c4_i32 : i32
    %c0_i32_0 = arith.constant 0 : i32
    %3 = arith.addi %2, %c0_i32_0 : i32
    %4 = arith.index_cast %3 : i32 to index
    %5 = memref.load %arg1[%4] : memref<32xi32, #tpu.memory_space<smem>>
    %c0_i32_1 = arith.constant 0 : i32
    %6 = arith.maxsi %5, %c0_i32_1 : i32
    %c63_i32 = arith.constant 63 : i32
    %7 = arith.minsi %6, %c63_i32 : i32
    %8 = arith.index_cast %7 : i32 to index
    %c0 = arith.constant 0 : index
    %9 = vector.load %arg2[%8, %c0] : memref<64x128xf32, #tpu.memory_space<vmem>>, vector<1x128xf32>
    %c1_i32 = arith.constant 1 : i32
    %10 = arith.addi %2, %c1_i32 : i32
    %11 = arith.index_cast %10 : i32 to index
    %12 = memref.load %arg1[%11] : memref<32xi32, #tpu.memory_space<smem>>
    %c0_i32_2 = arith.constant 0 : i32
    %13 = arith.maxsi %12, %c0_i32_2 : i32
    %c63_i32_3 = arith.constant 63 : i32
    %14 = arith.minsi %13, %c63_i32_3 : i32
    %15 = arith.index_cast %14 : i32 to index
    %c0_4 = arith.constant 0 : index
    %16 = vector.load %arg2[%15, %c0_4] : memref<64x128xf32, #tpu.memory_space<vmem>>, vector<1x128xf32>
    %17 = arith.addf %9, %16 : vector<1x128xf32>
    %c2_i32 = arith.constant 2 : i32
    %18 = arith.addi %2, %c2_i32 : i32
    %19 = arith.index_cast %18 : i32 to index
    %20 = memref.load %arg1[%19] : memref<32xi32, #tpu.memory_space<smem>>
    %c0_i32_5 = arith.constant 0 : i32
    %21 = arith.maxsi %20, %c0_i32_5 : i32
    %c63_i32_6 = arith.constant 63 : i32
    %22 = arith.minsi %21, %c63_i32_6 : i32
    %23 = arith.index_cast %22 : i32 to index
    %c0_7 = arith.constant 0 : index
    %24 = vector.load %arg2[%23, %c0_7] : memref<64x128xf32, #tpu.memory_space<vmem>>, vector<1x128xf32>
    %25 = arith.addf %17, %24 : vector<1x128xf32>
    %c3_i32 = arith.constant 3 : i32
    %26 = arith.addi %2, %c3_i32 : i32
    %27 = arith.index_cast %26 : i32 to index
    %28 = memref.load %arg1[%27] : memref<32xi32, #tpu.memory_space<smem>>
    %c0_i32_8 = arith.constant 0 : i32
    %29 = arith.maxsi %28, %c0_i32_8 : i32
    %c63_i32_9 = arith.constant 63 : i32
    %30 = arith.minsi %29, %c63_i32_9 : i32
    %31 = arith.index_cast %30 : i32 to index
    %c0_10 = arith.constant 0 : index
    %32 = vector.load %arg2[%31, %c0_10] : memref<64x128xf32, #tpu.memory_space<vmem>>, vector<1x128xf32>
    %33 = arith.addf %25, %32 : vector<1x128xf32>
    %c8_i32_11 = arith.constant 8 : i32
    %34 = arith.muli %arg0, %c8_i32_11 : i32
    %c1_i32_12 = arith.constant 1 : i32
    %35 = arith.addi %34, %c1_i32_12 : i32
    %c4_i32_13 = arith.constant 4 : i32
    %36 = arith.muli %35, %c4_i32_13 : i32
    %c0_i32_14 = arith.constant 0 : i32
    %37 = arith.addi %36, %c0_i32_14 : i32
    %38 = arith.index_cast %37 : i32 to index
    %39 = memref.load %arg1[%38] : memref<32xi32, #tpu.memory_space<smem>>
    %c0_i32_15 = arith.constant 0 : i32
    %40 = arith.maxsi %39, %c0_i32_15 : i32
    %c63_i32_16 = arith.constant 63 : i32
    %41 = arith.minsi %40, %c63_i32_16 : i32
    %42 = arith.index_cast %41 : i32 to index
    %c0_17 = arith.constant 0 : index
    %43 = vector.load %arg2[%42, %c0_17] : memref<64x128xf32, #tpu.memory_space<vmem>>, vector<1x128xf32>
    %c1_i32_18 = arith.constant 1 : i32
    %44 = arith.addi %36, %c1_i32_18 : i32
    %45 = arith.index_cast %44 : i32 to index
    %46 = memref.load %arg1[%45] : memref<32xi32, #tpu.memory_space<smem>>
    %c0_i32_19 = arith.constant 0 : i32
    %47 = arith.maxsi %46, %c0_i32_19 : i32
    %c63_i32_20 = arith.constant 63 : i32
    %48 = arith.minsi %47, %c63_i32_20 : i32
    %49 = arith.index_cast %48 : i32 to index
    %c0_21 = arith.constant 0 : index
    %50 = vector.load %arg2[%49, %c0_21] : memref<64x128xf32, #tpu.memory_space<vmem>>, vector<1x128xf32>
    %51 = arith.addf %43, %50 : vector<1x128xf32>
    %c2_i32_22 = arith.constant 2 : i32
    %52 = arith.addi %36, %c2_i32_22 : i32
    %53 = arith.index_cast %52 : i32 to index
    %54 = memref.load %arg1[%53] : memref<32xi32, #tpu.memory_space<smem>>
    %c0_i32_23 = arith.constant 0 : i32
    %55 = arith.maxsi %54, %c0_i32_23 : i32
    %c63_i32_24 = arith.constant 63 : i32
    %56 = arith.minsi %55, %c63_i32_24 : i32
    %57 = arith.index_cast %56 : i32 to index
    %c0_25 = arith.constant 0 : index
    %58 = vector.load %arg2[%57, %c0_25] : memref<64x128xf32, #tpu.memory_space<vmem>>, vector<1x128xf32>
    %59 = arith.addf %51, %58 : vector<1x128xf32>
    %c3_i32_26 = arith.constant 3 : i32
    %60 = arith.addi %36, %c3_i32_26 : i32
    %61 = arith.index_cast %60 : i32 to index
    %62 = memref.load %arg1[%61] : memref<32xi32, #tpu.memory_space<smem>>
    %c0_i32_27 = arith.constant 0 : i32
    %63 = arith.maxsi %62, %c0_i32_27 : i32
    %c63_i32_28 = arith.constant 63 : i32
    %64 = arith.minsi %63, %c63_i32_28 : i32
    %65 = arith.index_cast %64 : i32 to index
    %c0_29 = arith.constant 0 : index
    %66 = vector.load %arg2[%65, %c0_29] : memref<64x128xf32, #tpu.memory_space<vmem>>, vector<1x128xf32>
    %67 = arith.addf %59, %66 : vector<1x128xf32>
    %c8_i32_30 = arith.constant 8 : i32
    %68 = arith.muli %arg0, %c8_i32_30 : i32
    %c2_i32_31 = arith.constant 2 : i32
    %69 = arith.addi %68, %c2_i32_31 : i32
    %c4_i32_32 = arith.constant 4 : i32
    %70 = arith.muli %69, %c4_i32_32 : i32
    %c0_i32_33 = arith.constant 0 : i32
    %71 = arith.addi %70, %c0_i32_33 : i32
    %72 = arith.index_cast %71 : i32 to index
    %73 = memref.load %arg1[%72] : memref<32xi32, #tpu.memory_space<smem>>
    %c0_i32_34 = arith.constant 0 : i32
    %74 = arith.maxsi %73, %c0_i32_34 : i32
    %c63_i32_35 = arith.constant 63 : i32
    %75 = arith.minsi %74, %c63_i32_35 : i32
    %76 = arith.index_cast %75 : i32 to index
    %c0_36 = arith.constant 0 : index
    %77 = vector.load %arg2[%76, %c0_36] : memref<64x128xf32, #tpu.memory_space<vmem>>, vector<1x128xf32>
    %c1_i32_37 = arith.constant 1 : i32
    %78 = arith.addi %70, %c1_i32_37 : i32
    %79 = arith.index_cast %78 : i32 to index
    %80 = memref.load %arg1[%79] : memref<32xi32, #tpu.memory_space<smem>>
    %c0_i32_38 = arith.constant 0 : i32
    %81 = arith.maxsi %80, %c0_i32_38 : i32
    %c63_i32_39 = arith.constant 63 : i32
    %82 = arith.minsi %81, %c63_i32_39 : i32
    %83 = arith.index_cast %82 : i32 to index
    %c0_40 = arith.constant 0 : index
    %84 = vector.load %arg2[%83, %c0_40] : memref<64x128xf32, #tpu.memory_space<vmem>>, vector<1x128xf32>
    %85 = arith.addf %77, %84 : vector<1x128xf32>
    %c2_i32_41 = arith.constant 2 : i32
    %86 = arith.addi %70, %c2_i32_41 : i32
    %87 = arith.index_cast %86 : i32 to index
    %88 = memref.load %arg1[%87] : memref<32xi32, #tpu.memory_space<smem>>
    %c0_i32_42 = arith.constant 0 : i32
    %89 = arith.maxsi %88, %c0_i32_42 : i32
    %c63_i32_43 = arith.constant 63 : i32
    %90 = arith.minsi %89, %c63_i32_43 : i32
    %91 = arith.index_cast %90 : i32 to index
    %c0_44 = arith.constant 0 : index
    %92 = vector.load %arg2[%91, %c0_44] : memref<64x128xf32, #tpu.memory_space<vmem>>, vector<1x128xf32>
    %93 = arith.addf %85, %92 : vector<1x128xf32>
    %c3_i32_45 = arith.constant 3 : i32
    %94 = arith.addi %70, %c3_i32_45 : i32
    %95 = arith.index_cast %94 : i32 to index
    %96 = memref.load %arg1[%95] : memref<32xi32, #tpu.memory_space<smem>>
    %c0_i32_46 = arith.constant 0 : i32
    %97 = arith.maxsi %96, %c0_i32_46 : i32
    %c63_i32_47 = arith.constant 63 : i32
    %98 = arith.minsi %97, %c63_i32_47 : i32
    %99 = arith.index_cast %98 : i32 to index
    %c0_48 = arith.constant 0 : index
    %100 = vector.load %arg2[%99, %c0_48] : memref<64x128xf32, #tpu.memory_space<vmem>>, vector<1x128xf32>
    %101 = arith.addf %93, %100 : vector<1x128xf32>
    %c8_i32_49 = arith.constant 8 : i32
    %102 = arith.muli %arg0, %c8_i32_49 : i32
    %c3_i32_50 = arith.constant 3 : i32
    %103 = arith.addi %102, %c3_i32_50 : i32
    %c4_i32_51 = arith.constant 4 : i32
    %104 = arith.muli %103, %c4_i32_51 : i32
    %c0_i32_52 = arith.constant 0 : i32
    %105 = arith.addi %104, %c0_i32_52 : i32
    %106 = arith.index_cast %105 : i32 to index
    %107 = memref.load %arg1[%106] : memref<32xi32, #tpu.memory_space<smem>>
    %c0_i32_53 = arith.constant 0 : i32
    %108 = arith.maxsi %107, %c0_i32_53 : i32
    %c63_i32_54 = arith.constant 63 : i32
    %109 = arith.minsi %108, %c63_i32_54 : i32
    %110 = arith.index_cast %109 : i32 to index
    %c0_55 = arith.constant 0 : index
    %111 = vector.load %arg2[%110, %c0_55] : memref<64x128xf32, #tpu.memory_space<vmem>>, vector<1x128xf32>
    %c1_i32_56 = arith.constant 1 : i32
    %112 = arith.addi %104, %c1_i32_56 : i32
    %113 = arith.index_cast %112 : i32 to index
    %114 = memref.load %arg1[%113] : memref<32xi32, #tpu.memory_space<smem>>
    %c0_i32_57 = arith.constant 0 : i32
    %115 = arith.maxsi %114, %c0_i32_57 : i32
    %c63_i32_58 = arith.constant 63 : i32
    %116 = arith.minsi %115, %c63_i32_58 : i32
    %117 = arith.index_cast %116 : i32 to index
    %c0_59 = arith.constant 0 : index
    %118 = vector.load %arg2[%117, %c0_59] : memref<64x128xf32, #tpu.memory_space<vmem>>, vector<1x128xf32>
    %119 = arith.addf %111, %118 : vector<1x128xf32>
    %c2_i32_60 = arith.constant 2 : i32
    %120 = arith.addi %104, %c2_i32_60 : i32
    %121 = arith.index_cast %120 : i32 to index
    %122 = memref.load %arg1[%121] : memref<32xi32, #tpu.memory_space<smem>>
    %c0_i32_61 = arith.constant 0 : i32
    %123 = arith.maxsi %122, %c0_i32_61 : i32
    %c63_i32_62 = arith.constant 63 : i32
    %124 = arith.minsi %123, %c63_i32_62 : i32
    %125 = arith.index_cast %124 : i32 to index
    %c0_63 = arith.constant 0 : index
    %126 = vector.load %arg2[%125, %c0_63] : memref<64x128xf32, #tpu.memory_space<vmem>>, vector<1x128xf32>
    %127 = arith.addf %119, %126 : vector<1x128xf32>
    %c3_i32_64 = arith.constant 3 : i32
    %128 = arith.addi %104, %c3_i32_64 : i32
    %129 = arith.index_cast %128 : i32 to index
    %130 = memref.load %arg1[%129] : memref<32xi32, #tpu.memory_space<smem>>
    %c0_i32_65 = arith.constant 0 : i32
    %131 = arith.maxsi %130, %c0_i32_65 : i32
    %c63_i32_66 = arith.constant 63 : i32
    %132 = arith.minsi %131, %c63_i32_66 : i32
    %133 = arith.index_cast %132 : i32 to index
    %c0_67 = arith.constant 0 : index
    %134 = vector.load %arg2[%133, %c0_67] : memref<64x128xf32, #tpu.memory_space<vmem>>, vector<1x128xf32>
    %135 = arith.addf %127, %134 : vector<1x128xf32>
    %c8_i32_68 = arith.constant 8 : i32
    %136 = arith.muli %arg0, %c8_i32_68 : i32
    %c4_i32_69 = arith.constant 4 : i32
    %137 = arith.addi %136, %c4_i32_69 : i32
    %c4_i32_70 = arith.constant 4 : i32
    %138 = arith.muli %137, %c4_i32_70 : i32
    %c0_i32_71 = arith.constant 0 : i32
    %139 = arith.addi %138, %c0_i32_71 : i32
    %140 = arith.index_cast %139 : i32 to index
    %141 = memref.load %arg1[%140] : memref<32xi32, #tpu.memory_space<smem>>
    %c0_i32_72 = arith.constant 0 : i32
    %142 = arith.maxsi %141, %c0_i32_72 : i32
    %c63_i32_73 = arith.constant 63 : i32
    %143 = arith.minsi %142, %c63_i32_73 : i32
    %144 = arith.index_cast %143 : i32 to index
    %c0_74 = arith.constant 0 : index
    %145 = vector.load %arg2[%144, %c0_74] : memref<64x128xf32, #tpu.memory_space<vmem>>, vector<1x128xf32>
    %c1_i32_75 = arith.constant 1 : i32
    %146 = arith.addi %138, %c1_i32_75 : i32
    %147 = arith.index_cast %146 : i32 to index
    %148 = memref.load %arg1[%147] : memref<32xi32, #tpu.memory_space<smem>>
    %c0_i32_76 = arith.constant 0 : i32
    %149 = arith.maxsi %148, %c0_i32_76 : i32
    %c63_i32_77 = arith.constant 63 : i32
    %150 = arith.minsi %149, %c63_i32_77 : i32
    %151 = arith.index_cast %150 : i32 to index
    %c0_78 = arith.constant 0 : index
    %152 = vector.load %arg2[%151, %c0_78] : memref<64x128xf32, #tpu.memory_space<vmem>>, vector<1x128xf32>
    %153 = arith.addf %145, %152 : vector<1x128xf32>
    %c2_i32_79 = arith.constant 2 : i32
    %154 = arith.addi %138, %c2_i32_79 : i32
    %155 = arith.index_cast %154 : i32 to index
    %156 = memref.load %arg1[%155] : memref<32xi32, #tpu.memory_space<smem>>
    %c0_i32_80 = arith.constant 0 : i32
    %157 = arith.maxsi %156, %c0_i32_80 : i32
    %c63_i32_81 = arith.constant 63 : i32
    %158 = arith.minsi %157, %c63_i32_81 : i32
    %159 = arith.index_cast %158 : i32 to index
    %c0_82 = arith.constant 0 : index
    %160 = vector.load %arg2[%159, %c0_82] : memref<64x128xf32, #tpu.memory_space<vmem>>, vector<1x128xf32>
    %161 = arith.addf %153, %160 : vector<1x128xf32>
    %c3_i32_83 = arith.constant 3 : i32
    %162 = arith.addi %138, %c3_i32_83 : i32
    %163 = arith.index_cast %162 : i32 to index
    %164 = memref.load %arg1[%163] : memref<32xi32, #tpu.memory_space<smem>>
    %c0_i32_84 = arith.constant 0 : i32
    %165 = arith.maxsi %164, %c0_i32_84 : i32
    %c63_i32_85 = arith.constant 63 : i32
    %166 = arith.minsi %165, %c63_i32_85 : i32
    %167 = arith.index_cast %166 : i32 to index
    %c0_86 = arith.constant 0 : index
    %168 = vector.load %arg2[%167, %c0_86] : memref<64x128xf32, #tpu.memory_space<vmem>>, vector<1x128xf32>
    %169 = arith.addf %161, %168 : vector<1x128xf32>
    %c8_i32_87 = arith.constant 8 : i32
    %170 = arith.muli %arg0, %c8_i32_87 : i32
    %c5_i32 = arith.constant 5 : i32
    %171 = arith.addi %170, %c5_i32 : i32
    %c4_i32_88 = arith.constant 4 : i32
    %172 = arith.muli %171, %c4_i32_88 : i32
    %c0_i32_89 = arith.constant 0 : i32
    %173 = arith.addi %172, %c0_i32_89 : i32
    %174 = arith.index_cast %173 : i32 to index
    %175 = memref.load %arg1[%174] : memref<32xi32, #tpu.memory_space<smem>>
    %c0_i32_90 = arith.constant 0 : i32
    %176 = arith.maxsi %175, %c0_i32_90 : i32
    %c63_i32_91 = arith.constant 63 : i32
    %177 = arith.minsi %176, %c63_i32_91 : i32
    %178 = arith.index_cast %177 : i32 to index
    %c0_92 = arith.constant 0 : index
    %179 = vector.load %arg2[%178, %c0_92] : memref<64x128xf32, #tpu.memory_space<vmem>>, vector<1x128xf32>
    %c1_i32_93 = arith.constant 1 : i32
    %180 = arith.addi %172, %c1_i32_93 : i32
    %181 = arith.index_cast %180 : i32 to index
    %182 = memref.load %arg1[%181] : memref<32xi32, #tpu.memory_space<smem>>
    %c0_i32_94 = arith.constant 0 : i32
    %183 = arith.maxsi %182, %c0_i32_94 : i32
    %c63_i32_95 = arith.constant 63 : i32
    %184 = arith.minsi %183, %c63_i32_95 : i32
    %185 = arith.index_cast %184 : i32 to index
    %c0_96 = arith.constant 0 : index
    %186 = vector.load %arg2[%185, %c0_96] : memref<64x128xf32, #tpu.memory_space<vmem>>, vector<1x128xf32>
    %187 = arith.addf %179, %186 : vector<1x128xf32>
    %c2_i32_97 = arith.constant 2 : i32
    %188 = arith.addi %172, %c2_i32_97 : i32
    %189 = arith.index_cast %188 : i32 to index
    %190 = memref.load %arg1[%189] : memref<32xi32, #tpu.memory_space<smem>>
    %c0_i32_98 = arith.constant 0 : i32
    %191 = arith.maxsi %190, %c0_i32_98 : i32
    %c63_i32_99 = arith.constant 63 : i32
    %192 = arith.minsi %191, %c63_i32_99 : i32
    %193 = arith.index_cast %192 : i32 to index
    %c0_100 = arith.constant 0 : index
    %194 = vector.load %arg2[%193, %c0_100] : memref<64x128xf32, #tpu.memory_space<vmem>>, vector<1x128xf32>
    %195 = arith.addf %187, %194 : vector<1x128xf32>
    %c3_i32_101 = arith.constant 3 : i32
    %196 = arith.addi %172, %c3_i32_101 : i32
    %197 = arith.index_cast %196 : i32 to index
    %198 = memref.load %arg1[%197] : memref<32xi32, #tpu.memory_space<smem>>
    %c0_i32_102 = arith.constant 0 : i32
    %199 = arith.maxsi %198, %c0_i32_102 : i32
    %c63_i32_103 = arith.constant 63 : i32
    %200 = arith.minsi %199, %c63_i32_103 : i32
    %201 = arith.index_cast %200 : i32 to index
    %c0_104 = arith.constant 0 : index
    %202 = vector.load %arg2[%201, %c0_104] : memref<64x128xf32, #tpu.memory_space<vmem>>, vector<1x128xf32>
    %203 = arith.addf %195, %202 : vector<1x128xf32>
    %c8_i32_105 = arith.constant 8 : i32
    %204 = arith.muli %arg0, %c8_i32_105 : i32
    %c6_i32 = arith.constant 6 : i32
    %205 = arith.addi %204, %c6_i32 : i32
    %c4_i32_106 = arith.constant 4 : i32
    %206 = arith.muli %205, %c4_i32_106 : i32
    %c0_i32_107 = arith.constant 0 : i32
    %207 = arith.addi %206, %c0_i32_107 : i32
    %208 = arith.index_cast %207 : i32 to index
    %209 = memref.load %arg1[%208] : memref<32xi32, #tpu.memory_space<smem>>
    %c0_i32_108 = arith.constant 0 : i32
    %210 = arith.maxsi %209, %c0_i32_108 : i32
    %c63_i32_109 = arith.constant 63 : i32
    %211 = arith.minsi %210, %c63_i32_109 : i32
    %212 = arith.index_cast %211 : i32 to index
    %c0_110 = arith.constant 0 : index
    %213 = vector.load %arg2[%212, %c0_110] : memref<64x128xf32, #tpu.memory_space<vmem>>, vector<1x128xf32>
    %c1_i32_111 = arith.constant 1 : i32
    %214 = arith.addi %206, %c1_i32_111 : i32
    %215 = arith.index_cast %214 : i32 to index
    %216 = memref.load %arg1[%215] : memref<32xi32, #tpu.memory_space<smem>>
    %c0_i32_112 = arith.constant 0 : i32
    %217 = arith.maxsi %216, %c0_i32_112 : i32
    %c63_i32_113 = arith.constant 63 : i32
    %218 = arith.minsi %217, %c63_i32_113 : i32
    %219 = arith.index_cast %218 : i32 to index
    %c0_114 = arith.constant 0 : index
    %220 = vector.load %arg2[%219, %c0_114] : memref<64x128xf32, #tpu.memory_space<vmem>>, vector<1x128xf32>
    %221 = arith.addf %213, %220 : vector<1x128xf32>
    %c2_i32_115 = arith.constant 2 : i32
    %222 = arith.addi %206, %c2_i32_115 : i32
    %223 = arith.index_cast %222 : i32 to index
    %224 = memref.load %arg1[%223] : memref<32xi32, #tpu.memory_space<smem>>
    %c0_i32_116 = arith.constant 0 : i32
    %225 = arith.maxsi %224, %c0_i32_116 : i32
    %c63_i32_117 = arith.constant 63 : i32
    %226 = arith.minsi %225, %c63_i32_117 : i32
    %227 = arith.index_cast %226 : i32 to index
    %c0_118 = arith.constant 0 : index
    %228 = vector.load %arg2[%227, %c0_118] : memref<64x128xf32, #tpu.memory_space<vmem>>, vector<1x128xf32>
    %229 = arith.addf %221, %228 : vector<1x128xf32>
    %c3_i32_119 = arith.constant 3 : i32
    %230 = arith.addi %206, %c3_i32_119 : i32
    %231 = arith.index_cast %230 : i32 to index
    %232 = memref.load %arg1[%231] : memref<32xi32, #tpu.memory_space<smem>>
    %c0_i32_120 = arith.constant 0 : i32
    %233 = arith.maxsi %232, %c0_i32_120 : i32
    %c63_i32_121 = arith.constant 63 : i32
    %234 = arith.minsi %233, %c63_i32_121 : i32
    %235 = arith.index_cast %234 : i32 to index
    %c0_122 = arith.constant 0 : index
    %236 = vector.load %arg2[%235, %c0_122] : memref<64x128xf32, #tpu.memory_space<vmem>>, vector<1x128xf32>
    %237 = arith.addf %229, %236 : vector<1x128xf32>
    %c8_i32_123 = arith.constant 8 : i32
    %238 = arith.muli %arg0, %c8_i32_123 : i32
    %c7_i32 = arith.constant 7 : i32
    %239 = arith.addi %238, %c7_i32 : i32
    %c4_i32_124 = arith.constant 4 : i32
    %240 = arith.muli %239, %c4_i32_124 : i32
    %c0_i32_125 = arith.constant 0 : i32
    %241 = arith.addi %240, %c0_i32_125 : i32
    %242 = arith.index_cast %241 : i32 to index
    %243 = memref.load %arg1[%242] : memref<32xi32, #tpu.memory_space<smem>>
    %c0_i32_126 = arith.constant 0 : i32
    %244 = arith.maxsi %243, %c0_i32_126 : i32
    %c63_i32_127 = arith.constant 63 : i32
    %245 = arith.minsi %244, %c63_i32_127 : i32
    %246 = arith.index_cast %245 : i32 to index
    %c0_128 = arith.constant 0 : index
    %247 = vector.load %arg2[%246, %c0_128] : memref<64x128xf32, #tpu.memory_space<vmem>>, vector<1x128xf32>
    %c1_i32_129 = arith.constant 1 : i32
    %248 = arith.addi %240, %c1_i32_129 : i32
    %249 = arith.index_cast %248 : i32 to index
    %250 = memref.load %arg1[%249] : memref<32xi32, #tpu.memory_space<smem>>
    %c0_i32_130 = arith.constant 0 : i32
    %251 = arith.maxsi %250, %c0_i32_130 : i32
    %c63_i32_131 = arith.constant 63 : i32
    %252 = arith.minsi %251, %c63_i32_131 : i32
    %253 = arith.index_cast %252 : i32 to index
    %c0_132 = arith.constant 0 : index
    %254 = vector.load %arg2[%253, %c0_132] : memref<64x128xf32, #tpu.memory_space<vmem>>, vector<1x128xf32>
    %255 = arith.addf %247, %254 : vector<1x128xf32>
    %c2_i32_133 = arith.constant 2 : i32
    %256 = arith.addi %240, %c2_i32_133 : i32
    %257 = arith.index_cast %256 : i32 to index
    %258 = memref.load %arg1[%257] : memref<32xi32, #tpu.memory_space<smem>>
    %c0_i32_134 = arith.constant 0 : i32
    %259 = arith.maxsi %258, %c0_i32_134 : i32
    %c63_i32_135 = arith.constant 63 : i32
    %260 = arith.minsi %259, %c63_i32_135 : i32
    %261 = arith.index_cast %260 : i32 to index
    %c0_136 = arith.constant 0 : index
    %262 = vector.load %arg2[%261, %c0_136] : memref<64x128xf32, #tpu.memory_space<vmem>>, vector<1x128xf32>
    %263 = arith.addf %255, %262 : vector<1x128xf32>
    %c3_i32_137 = arith.constant 3 : i32
    %264 = arith.addi %240, %c3_i32_137 : i32
    %265 = arith.index_cast %264 : i32 to index
    %266 = memref.load %arg1[%265] : memref<32xi32, #tpu.memory_space<smem>>
    %c0_i32_138 = arith.constant 0 : i32
    %267 = arith.maxsi %266, %c0_i32_138 : i32
    %c63_i32_139 = arith.constant 63 : i32
    %268 = arith.minsi %267, %c63_i32_139 : i32
    %269 = arith.index_cast %268 : i32 to index
    %c0_140 = arith.constant 0 : index
    %270 = vector.load %arg2[%269, %c0_140] : memref<64x128xf32, #tpu.memory_space<vmem>>, vector<1x128xf32>
    %271 = arith.addf %263, %270 : vector<1x128xf32>
    %272 = tpu.concatenate %33, %67, %101, %135, %169, %203, %237, %271 in 0 : vector<1x128xf32>, vector<1x128xf32>, vector<1x128xf32>, vector<1x128xf32>, vector<1x128xf32>, vector<1x128xf32>, vector<1x128xf32>, vector<1x128xf32> -> vector<8x128xf32>
    %273 = arith.truncf %272 : vector<8x128xf32> to vector<8x128xbf16>
    %c0_141 = arith.constant 0 : index
    %c0_142 = arith.constant 0 : index
    %274 = vector.load %arg3[%c0_141, %c0_142] : memref<128x128xbf16, #tpu.memory_space<vmem>>, vector<128x128xbf16>
    %cst = arith.constant dense<0.000000e+00> : vector<8x128xf32>
    %275 = tpu.matmul %273, %274, %cst {dimension_numbers = #tpu.dot_dimension_numbers<[1], [0], [0], [1], [0, 0, 1, 1], [], []>} : vector<8x128xbf16>, vector<128x128xbf16>, vector<8x128xf32> -> vector<8x128xf32>
    %c0_143 = arith.constant 0 : index
    %c0_144 = arith.constant 0 : index
    %276 = vector.load %arg4[%c0_143, %c0_144] : memref<1x128xf32, #tpu.memory_space<vmem>>, vector<1x128xf32>
    %277 = vector.broadcast %276 : vector<1x128xf32> to vector<8x128xf32>
    %278 = arith.addf %275, %277 : vector<8x128xf32>
    %cst_145 = arith.constant dense<0xFF800000> : vector<8xf32>
    %279 = vector.multi_reduction <maximumf>, %278, %cst_145 [1] : vector<8x128xf32> to vector<8xf32>
    %280 = vector.shape_cast %279 : vector<8xf32> to vector<8x1xf32>
    %281 = vector.broadcast %280 : vector<8x1xf32> to vector<8x128xf32>
    %282 = arith.subf %278, %281 : vector<8x128xf32>
    %283 = math.exp %282 : vector<8x128xf32>
    %cst_146 = arith.constant dense<0.000000e+00> : vector<8xf32>
    %284 = vector.multi_reduction <add>, %283, %cst_146 [1] : vector<8x128xf32> to vector<8xf32>
    %285 = vector.shape_cast %284 : vector<8xf32> to vector<8x1xf32>
    %286 = math.log %285 : vector<8x1xf32>
    %287 = vector.broadcast %286 : vector<8x1xf32> to vector<8x128xf32>
    %288 = arith.subf %282, %287 : vector<8x128xf32>
    %c0_147 = arith.constant 0 : index
    %c0_148 = arith.constant 0 : index
    %289 = vector.load %arg5[%c0_147, %c0_148] : memref<8x128xf32, #tpu.memory_space<vmem>>, vector<8x128xf32>
    tpu.vector_store %arg5[%c0_147, %c0_148], %288 {strides = array<i32>} : memref<8x128xf32, #tpu.memory_space<vmem>>, vector<8x128xf32>,
    return
  }
  func.func @transform_0(%arg0: i32, %arg1: memref<32xi32, #tpu.memory_space<smem>>) -> (i32, i32) {
    %c0_i32 = arith.constant 0 : i32
    %c0_i32_0 = arith.constant 0 : i32
    %c0_i32_1 = arith.constant 0 : i32
    return %c0_i32, %c0_i32_0 : i32, i32
  }
  func.func @transform_1(%arg0: i32, %arg1: memref<32xi32, #tpu.memory_space<smem>>) -> (i32, i32) {
    %c0_i32 = arith.constant 0 : i32
    %c0_i32_0 = arith.constant 0 : i32
    %c0_i32_1 = arith.constant 0 : i32
    return %c0_i32, %c0_i32_0 : i32, i32
  }
  func.func @transform_2(%arg0: i32, %arg1: memref<32xi32, #tpu.memory_space<smem>>) -> (i32, i32) {
    %c0_i32 = arith.constant 0 : i32
    %c0_i32_0 = arith.constant 0 : i32
    %c0_i32_1 = arith.constant 0 : i32
    return %c0_i32, %c0_i32_0 : i32, i32
  }
  func.func @transform_3(%arg0: i32, %arg1: memref<32xi32, #tpu.memory_space<smem>>) -> (i32, i32) {
    %c0_i32 = arith.constant 0 : i32
    %c0_i32_0 = arith.constant 0 : i32
    return %arg0, %c0_i32 : i32, i32
  }
}

</mosaic_0001>

<bundles_post_ra>
// kernel: tpu_custom_call.1
= control target key start
LH: loop header
LB: loop body
LE: loop exit
PB: predicated region body
PF: predicated region fallthrough
CT: control target
= control target key end

     0   :  { %s934_s15 = smov [#allocation3]   ;;  %s1133_s0 = inlined_call_operand.hbm [shape: s32[32], index: 0, kind: input, shape index: {}]   ;;  %s1134_s1 = inlined_call_operand.hbm [shape: f32[64,128], index: 1, kind: input, shape index: {}]   ;;  %s1135_s2 = inlined_call_operand.hbm [shape: bf16[128,128], index: 2, kind: input, shape index: {}]   ;;  %s1136_s3 = inlined_call_operand.vmem [shape: f32[1,128], index: 3, kind: input, shape index: {}]   ;;  %s1137_s4 = inlined_call_operand.hbm [shape: f32[8,128], index: 4, kind: output, shape index: {}]  }
   0x1   :  { %1138 = sst [smem:[#allocation18_spill]] %s1136_s3 }
   0x2   :  { %1139 = sst [smem:[#allocation19_spill]] %s1137_s4 }
   0x3   :  { %10 = dma.hbm_to_smem %s1133_s0, 16, %s934_s15, [#allocation2] }
   0x4   :  { %926 = dma.done.wait [#allocation2], 16 }
   0x5   :  { %927 = vsyncadd [#allocation2], 4294967280 }
   0x6   :  { %12 = sfence }
   0x7   :  { %13 = vsyncpa [#allocation5], 0 }
   0x8   :  { %14 = vsyncpa [#allocation8], 0 }
   0x9   :  { %15 = vsyncpa [#allocation6], 0  ;;  %s935_s18 = smov [#allocation4]  }
   0xa   :  { %s21_s19 = sshll.u32 %s935_s18, 4  ;;  %s22_s19 = int_to_ptr.vmem [resolvable:$true] %s21_s19 }
   0xb   :  { %s874_s20 = scalar_lea.vmem %s22_s19, 1024  ;;  %p879_p1 = scmp.lt.s32.totalorder %s22_s19, %s22_s19 }
   0xc   :  { %p875_p0 = scmp.ne.s32.totalorder %s22_s19, %s874_s20  ;;  %p880_p2 = scmp.lt.s32.totalorder %s874_s20, %s874_s20 }
   0xe   :  { %p881_p3 = por %p880_p2, %p879_p1 }
  0x10   :  { %p882_p4 = pnand %p881_p3, %p875_p0 }
  0x12   :  { %885 = shalt.err (!%p882_p4)
}
  0x13   :  { %s936_s21 = smov 128   ;;  %s937_s22 = smov 8  }
  0x14   :  { %27 = dma.hbm_to_vmem [thread:$0]  %s1134_s1, 1024, %s22_s19, [#allocation5], %s936_s21, %s936_s21, %s937_s22  }
  0x15   :  { %s938_s24 = smov [#allocation7]  }
  0x16   :  { %s33_s25 = sshll.u32 %s938_s24, 4  ;;  %s34_s25 = int_to_ptr.vmem [resolvable:$true] %s33_s25 }
  0x17   :  { %s894_s26 = scalar_lea.vmem %s34_s25, 1024  ;;  %p899_p6 = scmp.lt.s32.totalorder %s34_s25, %s34_s25 }
  0x18   :  { %p895_p5 = scmp.ne.s32.totalorder %s34_s25, %s894_s26  ;;  %p900_p7 = scmp.lt.s32.totalorder %s894_s26, %s894_s26 }
  0x1a   :  { %p901_p8 = por %p900_p7, %p899_p6 }
  0x1c   :  { %p902_p9 = pnand %p901_p8, %p895_p5 }
  0x1e   :  { %905 = shalt.err (!%p902_p9)
}
  0x1f   :  { %s939_s27 = smov 64   ;;  %s940_s28 = smov 4  }
  0x20   :  { %39 = dma.hbm_to_vmem [thread:$0]  %s1135_s2, 1024, %s34_s25, [#allocation8], %s939_s27, %s939_s27, %s940_s28  }
  0x21   :  { %928 = dma.done.wait [#allocation5], 1024  }
  0x22   :  { %929 = vsyncadd [#allocation5], 4294966272 }
  0x23   :  { %930 = dma.done.wait [#allocation8], 1024  }
  0x24   :  { %931 = vsyncadd [#allocation8], 4294966272  ;;  %v941_v0 = vmov 0.0   ;;  %vm942_vm0 = vmmov 0   ;;  %s50_s1 = sld [smem:[#allocation3]]  ;;  %v846_v1 = vld [vmem:[#allocation7 + $0x38] sm:$0xff]  }
  0x25   :  { %816 = vmatprep.subr.bf16.mxu0 %v941_v0  ;;  %832 = vmatprep.mubr.msk.bf16.mxu0 %vm942_vm0, %v941_v0  ;;  %s978_s5 = sld [smem:[#allocation3 + $0x1]]  ;;  %v847_v2 = vld [vmem:[#allocation7 + $0x30] sm:$0xff]   ;;  %v848_v3 = vld [vmem:[#allocation7 + $0x28] sm:$0xff]   ;;  %v849_v4 = vld [vmem:[#allocation7 + $0x20] sm:$0xff]   ;;  %vm358_vm1 = vcmask 1040384   ;;  %vm360_vm2 = vcmask 1041408  }
  0x26   :  { %s980_s6 = sld [smem:[#allocation3 + $0x2]]  ;;  %817 = vmatpush3.bf16.msra.mxu0 %v846_v1  ;;  %v850_v5 = vld [vmem:[#allocation7 + $0x18] sm:$0xff]   ;;  %v851_v6 = vld [vmem:[#allocation7 + $0x10] sm:$0xff]   ;;  %v852_v7 = vld [vmem:[#allocation7 + $0x8] sm:$0xff]   ;;  %vm362_vm3 = vcmask 1042432   ;;  %vm364_vm4 = vcmask 1043456  }
  0x27   :  { %818 = vmatprep.subr.bf16.mxu0 %v941_v0  ;;  %s982_s2 = sld [smem:[#allocation3 + $0x3]]  ;;  %v853_v8 = vld [vmem:[#allocation7] sm:$0xff]   ;;  %vm366_vm5 = vcmask 1044480   ;;  %vm368_vm6 = vcmask 1045504   ;;  %vm370_vm7 = vcmask 1046528  }
  0x28   :  { %s984_s7 = sld [smem:[#allocation3 + $0x4]] }
  0x29   :  { %s987_s8 = sld [smem:[#allocation3 + $0x5]] }
  0x2a   :  { %p51_p10 = scmp.gt.s32.totalorder %s50_s1, 0  ;;  %819 = vmatpush3.bf16.msra.mxu0 %v847_v2  ;;  %p543_p12 = scmp.lt.s32.totalorder %s50_s1, 63 }
  0x2b   :  { %p59_p11 = scmp.gt.s32.totalorder %s978_s5, 0  ;;  %820 = vmatprep.subr.bf16.mxu0 %v941_v0  ;;  %p549_p0 = scmp.lt.s32.totalorder %s978_s5, 63 }
  0x2c   :  { %p68_p13 = scmp.gt.s32.totalorder %s980_s6, 0  ;;  %s1151_s1 = smov (!%p51_p10, %s50_s1), 0 }
  0x2d   :  { %s60_s9 = scalar_select %p59_p11, %s978_s5, 0 }
  0x2e   :  { %821 = vmatpush3.bf16.msra.mxu0 %v848_v3  ;;  %p555_p1 = scmp.lt.s32.totalorder %s980_s6, 63  ;;  %s1153_s6 = smov (!%p68_p13, %s980_s6), 0 }
  0x2f   :  { %822 = vmatprep.subr.bf16.mxu0 %v941_v0  ;;  %s1155_s1 = smov (!%p543_p12, %s1151_s1), 63  ;;  %p77_p2 = scmp.gt.s32.totalorder %s982_s2, 0 }
  0x30   :  { %s1157_s9 = smov (!%p549_p0, %s60_s9), 63  ;;  %s1159_s6 = smov (!%p555_p1, %s1153_s6), 63 }
  0x31   :  { %p88_p3 = scmp.gt.s32.totalorder %s984_s7, 0  ;;  %p561_p4 = scmp.lt.s32.totalorder %s982_s2, 63 }
  0x32   :  { %823 = vmatpush3.bf16.msra.mxu0 %v849_v4  ;;  %s78_s10 = scalar_select %p77_p2, %s982_s2, 0 }
  0x33   :  { %824 = vmatprep.subr.bf16.mxu0 %v941_v0  ;;  %p96_p5 = scmp.gt.s32.totalorder %s987_s8, 0  ;;  %p567_p6 = scmp.lt.s32.totalorder %s984_s7, 63 }
  0x34   :  { %s89_s11 = scalar_select %p88_p3, %s984_s7, 0 }
  0x35   :  { %s578_s12 = sld [smem:[#allocation3 + $0x6]]  ;;  %s1161_s10 = smov (!%p561_p4, %s78_s10), 63 }
  0x36   :  { %825 = vmatpush3.bf16.msra.mxu0 %v850_v5  ;;  %s97_s13 = scalar_select %p96_p5, %s987_s8, 0 }
  0x37   :  { %826 = vmatprep.subr.bf16.mxu0 %v941_v0  ;;  %p573_p7 = scmp.lt.s32.totalorder %s987_s8, 63  ;;  %s584_s14 = sld [smem:[#allocation3 + $0x7]] }
  0x38   :  { %s1163_s11 = smov (!%p567_p6, %s89_s11), 63  ;;  %s590_s15 = sld [smem:[#allocation3 + $0x8]] }
  0x39   :  { %s1165_s13 = smov (!%p573_p7, %s97_s13), 63  ;;  %s596_s16 = sld [smem:[#allocation3 + $0x9]] }
  0x3a   :  { %827 = vmatpush3.bf16.msra.mxu0 %v851_v6  ;;  %s602_s17 = sld [smem:[#allocation3 + $0xa]]  ;;  %s92_s4 = scalar_lea.vmem [#allocation4], %s1163_s11 }
  0x3b   :  { %828 = vmatprep.subr.bf16.mxu0 %v941_v0  ;;  %p105_p8 = scmp.gt.s32.totalorder %s578_s12, 0  ;;  %p579_p9 = scmp.lt.s32.totalorder %s578_s12, 63  ;;  %v93_v9 = vld [vmem:[%s92_s4] sm:$0x1] }
  0x3c   :  { %s608_s18 = sld [smem:[#allocation3 + $0xb]]  ;;  %s100_s3 = scalar_lea.vmem [#allocation4], %s1165_s13 }
  0x3d   :  { %s1167_s12 = smov (!%p105_p8, %s578_s12), 0  ;;  %p114_p10 = scmp.gt.s32.totalorder %s584_s14, 0  ;;  %v101_v10 = vld [vmem:[%s100_s3] sm:$0x1] }
  0x3e   :  { %829 = vmatpush3.bf16.msra.mxu0 %v852_v7  ;;  %p124_p11 = scmp.gt.s32.totalorder %s590_s15, 0  ;;  %s1169_s12 = smov (!%p579_p9, %s1167_s12), 63  ;;  %v102_v12 = vadd.f32 %v101_v10, %v93_v9 }
  0x3f   :  { %830 = vmatprep.subr.bf16.mxu0 %v941_v0  ;;  %s115_s19 = scalar_select %p114_p10, %s584_s14, 0 }
  0x40   :  { %p585_p12 = scmp.lt.s32.totalorder %s584_s14, 63  ;;  %p132_p13 = scmp.gt.s32.totalorder %s596_s16, 0 }
  0x41   :  { %s125_s20 = scalar_select %p124_p11, %s590_s15, 0 }
  0x42   :  { %831 = vmatpush3.bf16.msra.mxu0 %v853_v8  ;;  %p591_p0 = scmp.lt.s32.totalorder %s590_s15, 63  ;;  %p597_p1 = scmp.lt.s32.totalorder %s596_s16, 63 }
  0x43   :  { %s1171_s16 = smov (!%p132_p13, %s596_s16), 0  ;;  %p141_p2 = scmp.gt.s32.totalorder %s602_s17, 0 }
  0x44   :  { %s1173_s19 = smov (!%p585_p12, %s115_s19), 63  ;;  %s1175_s20 = smov (!%p591_p0, %s125_s20), 63 }
  0x45   :  { %s1177_s16 = smov (!%p597_p1, %s1171_s16), 63  ;;  %p150_p3 = scmp.gt.s32.totalorder %s608_s18, 0 }
  0x46   :  { %s142_s21 = scalar_select %p141_p2, %s602_s17, 0 }
  0x47   :  { %s614_s22 = sld [smem:[#allocation3 + $0xc]]  ;;  %p603_p4 = scmp.lt.s32.totalorder %s602_s17, 63 }
  0x48   :  { %p609_p5 = scmp.lt.s32.totalorder %s608_s18, 63  ;;  %s620_s23 = sld [smem:[#allocation3 + $0xd]] }
  0x49   :  { %s1179_s18 = smov (!%p150_p3, %s608_s18), 0  ;;  %s626_s0 = sld [smem:[#allocation3 + $0xe]] }
  0x4a   :  { %s1181_s21 = smov (!%p603_p4, %s142_s21), 63  ;;  %s1183_s18 = smov (!%p609_p5, %s1179_s18), 63 }
  0x4b   :  { %s632_s24 = sld [smem:[#allocation3 + $0xf]]  ;;  %s63_s3 = scalar_lea.vmem [#allocation4], %s1157_s9 }
  0x4c   :  { %s638_s25 = sld [smem:[#allocation3 + $0x10]]  ;;  %v64_v15 = vld [vmem:[%s63_s3] sm:$0x1]  ;;  %s109_s4 = scalar_lea.vmem [#allocation4], %s1169_s12 }
  0x4d   :  { %p160_p6 = scmp.gt.s32.totalorder %s614_s22, 0  ;;  %p615_p7 = scmp.lt.s32.totalorder %s614_s22, 63  ;;  %v110_v16 = vld [vmem:[%s109_s4] sm:$0x1] }
  0x4e   :  { %p168_p8 = scmp.gt.s32.totalorder %s620_s23, 0  ;;  %s644_s26 = sld [smem:[#allocation3 + $0x11]]  ;;  %v111_v21 = vadd.f32 %v110_v16, %v102_v12 }
  0x4f   :  { %s1185_s22 = smov (!%p160_p6, %s614_s22), 0  ;;  %p621_p9 = scmp.lt.s32.totalorder %s620_s23, 63 }
  0x50   :  { %p177_p10 = scmp.gt.s32.totalorder %s626_s0, 0  ;;  %s1187_s22 = smov (!%p615_p7, %s1185_s22), 63 }
  0x51   :  { %s1189_s23 = smov (!%p168_p8, %s620_s23), 0  ;;  %p186_p11 = scmp.gt.s32.totalorder %s632_s24, 0 }
  0x52   :  { %s178_s27 = scalar_select %p177_p10, %s626_s0, 0 }
  0x53   :  { %p627_p12 = scmp.lt.s32.totalorder %s626_s0, 63  ;;  %p633_p13 = scmp.lt.s32.totalorder %s632_s24, 63 }
  0x54   :  { %s1191_s24 = smov (!%p186_p11, %s632_s24), 0  ;;  %s1193_s23 = smov (!%p621_p9, %s1189_s23), 63 }
  0x55   :  { %p196_p0 = scmp.gt.s32.totalorder %s638_s25, 0  ;;  %s1195_s27 = smov (!%p627_p12, %s178_s27), 63 }
  0x56   :  { %s1197_s24 = smov (!%p633_p13, %s1191_s24), 63  ;;  %p204_p1 = scmp.gt.s32.totalorder %s644_s26, 0 }
  0x57   :  { %1140 = sst [smem:[#allocation14_spill]] %s1197_s24  ;;  %p639_p2 = scmp.lt.s32.totalorder %s638_s25, 63 }
  0x58   :  { %s197_s28 = scalar_select %p196_p0, %s638_s25, 0 }
  0x59   :  { %p645_p3 = scmp.lt.s32.totalorder %s644_s26, 63  ;;  %s650_s29 = sld [smem:[#allocation3 + $0x12]] }
  0x5a   :  { %s1199_s26 = smov (!%p204_p1, %s644_s26), 0  ;;  %s656_s30 = sld [smem:[#allocation3 + $0x13]] }
  0x5b   :  { %s1201_s28 = smov (!%p639_p2, %s197_s28), 63  ;;  %s662_s5 = sld [smem:[#allocation3 + $0x14]] }
  0x5c   :  { %s1203_s26 = smov (!%p645_p3, %s1199_s26), 63  ;;  %s668_s2 = sld [smem:[#allocation3 + $0x15]] }
  0x5d   :  { %s674_s8 = sld [smem:[#allocation3 + $0x16]]  ;;  %s136_s24 = scalar_lea.vmem [#allocation4], %s1177_s16 }
  0x5e   :  { %s680_s14 = sld [smem:[#allocation3 + $0x17]]  ;;  %v137_v14 = vld [vmem:[%s136_s24] sm:$0x1]  ;;  %s164_s13 = scalar_lea.vmem [#allocation4], %s1187_s22 }
  0x5f   :  { %p213_p4 = scmp.gt.s32.totalorder %s650_s29, 0  ;;  %p651_p5 = scmp.lt.s32.totalorder %s650_s29, 63  ;;  %v165_v18 = vld [vmem:[%s164_s13] sm:$0x1] }
  0x60   :  { %p222_p6 = scmp.gt.s32.totalorder %s656_s30, 0  ;;  %p657_p7 = scmp.lt.s32.totalorder %s656_s30, 63 }
  0x61   :  { %s214_s7 = scalar_select %p213_p4, %s650_s29, 0 }
  0x62   :  { %s1205_s30 = smov (!%p222_p6, %s656_s30), 0  ;;  %p232_p8 = scmp.gt.s32.totalorder %s662_s5, 0 }
  0x63   :  { %s1207_s7 = smov (!%p651_p5, %s214_s7), 63  ;;  %s1209_s30 = smov (!%p657_p7, %s1205_s30), 63 }
  0x64   :  { %1141 = sst [smem:[#allocation15_spill]] %s1209_s30  ;;  %p663_p9 = scmp.lt.s32.totalorder %s662_s5, 63 }
  0x65   :  { %s233_s15 = scalar_select %p232_p8, %s662_s5, 0 }
  0x66   :  { %p240_p10 = scmp.gt.s32.totalorder %s668_s2, 0  ;;  %p669_p11 = scmp.lt.s32.totalorder %s668_s2, 63 }
  0x67   :  { %p249_p12 = scmp.gt.s32.totalorder %s674_s8, 0  ;;  %s1213_s15 = smov (!%p663_p9, %s233_s15), 63 }
  0x68   :  { %s1211_s2 = smov (!%p240_p10, %s668_s2), 0  ;;  %p675_p13 = scmp.lt.s32.totalorder %s674_s8, 63 }
  0x69   :  { %s1215_s2 = smov (!%p669_p11, %s1211_s2), 63  ;;  %p258_p0 = scmp.gt.s32.totalorder %s680_s14, 0 }
  0x6a   :  { %s250_s17 = scalar_select %p249_p12, %s674_s8, 0 }
  0x6b   :  { %p681_p1 = scmp.lt.s32.totalorder %s680_s14, 63  ;;  %s1217_s14 = smov (!%p258_p0, %s680_s14), 0 }
  0x6c   :  { %s686_s0 = sld [smem:[#allocation3 + $0x18]]  ;;  %s1219_s17 = smov (!%p675_p13, %s250_s17), 63 }
  0x6d   :  { %1142 = sst [smem:[#allocation16_spill]] %s1219_s17  ;;  %s1221_s14 = smov (!%p681_p1, %s1217_s14), 63 }
  0x6e   :  { %s692_s25 = sld [smem:[#allocation3 + $0x19]]  ;;  %s55_s30 = scalar_lea.vmem [#allocation4], %s1155_s1 }
  0x6f   :  { %1143 = sst [smem:[#allocation17_spill]] %s1221_s14  ;;  %v56_v11 = vld [vmem:[%s55_s30] sm:$0x1]  ;;  %s128_s17 = scalar_lea.vmem [#allocation4], %s1175_s20 }
  0x70   :  { %s1051_s29 = sld [smem:[#allocation3 + $0x1a]]  ;;  %v129_v13 = vld [vmem:[%s128_s17] sm:$0x1]  ;;  %s172_s16 = scalar_lea.vmem [#allocation4], %s1193_s23  ;;  %v65_v20 = vadd.f32 %v64_v15, %v56_v11 }
  0x71   :  { %s1053_s5 = sld [smem:[#allocation3 + $0x1b]]  ;;  %v138_v17 = vadd.f32 %v137_v14, %v129_v13  ;;  %v173_v19 = vld [vmem:[%s172_s16] sm:$0x1]  ;;  %s145_s9 = scalar_lea.vmem [#allocation4], %s1181_s21 }
  0x72   :  { %p268_p2 = scmp.gt.s32.totalorder %s686_s0, 0  ;;  %p687_p3 = scmp.lt.s32.totalorder %s686_s0, 63  ;;  %v146_v22 = vld [vmem:[%s145_s9] sm:$0x1]  ;;  %v174_v25 = vadd.f32 %v173_v19, %v165_v18 }
  0x73   :  { %s1055_s8 = sld [smem:[#allocation3 + $0x1c]]  ;;  %s72_s12 = scalar_lea.vmem [#allocation4], %s1159_s6  ;;  %v147_v28 = vadd.f32 %v146_v22, %v138_v17 }
  0x74   :  { %s1223_s0 = smov (!%p268_p2, %s686_s0), 0  ;;  %p276_p4 = scmp.gt.s32.totalorder %s692_s25, 0  ;;  %v73_v23 = vld [vmem:[%s72_s12] sm:$0x1] }
  0x75   :  { %p693_p5 = scmp.lt.s32.totalorder %s692_s25, 63  ;;  %s1225_s0 = smov (!%p687_p3, %s1223_s0), 63  ;;  %v74_v30 = vadd.f32 %v73_v23, %v65_v20 }
  0x76   :  { %s277_s14 = scalar_select %p276_p4, %s692_s25, 0 }
  0x77   :  { %p285_p6 = scmp.gt.s32.totalorder %s1051_s29, 0  ;;  %p699_p7 = scmp.lt.s32.totalorder %s1051_s29, 63 }
  0x78   :  { %s1227_s14 = smov (!%p693_p5, %s277_s14), 63  ;;  %s1072_s11 = sld [smem:[#allocation3 + $0x1d]] }
  0x79   :  { %s286_s1 = scalar_select %p285_p6, %s1051_s29, 0 }
  0x7a   :  { %p294_p8 = scmp.gt.s32.totalorder %s1053_s5, 0  ;;  %p705_p9 = scmp.lt.s32.totalorder %s1053_s5, 63 }
  0x7b   :  { %s1229_s1 = smov (!%p699_p7, %s286_s1), 63  ;;  %s118_s20 = scalar_lea.vmem [#allocation4], %s1173_s19 }
  0x7c   :  { %v119_v24 = vld [vmem:[%s118_s20] sm:$0x1]  ;;  %s295_s22 = scalar_select %p294_p8, %s1053_s5, 0 }
  0x7d   :  { %s200_s23 = scalar_lea.vmem [#allocation4], %s1201_s28  ;;  %s208_s24 = scalar_lea.vmem [#allocation4], %s1203_s26  ;;  %v120_v32 = vadd.f32 %v119_v24, %v111_v21 }
  0x7e   :  { %v201_v26 = vld [vmem:[%s200_s23] sm:$0x1]  ;;  %p304_p10 = scmp.gt.s32.totalorder %s1055_s8, 0  ;;  %s181_s21 = scalar_lea.vmem [#allocation4], %s1195_s27 }
  0x7f   :  { %v209_v27 = vld [vmem:[%s208_s24] sm:$0x1]  ;;  %s1231_s22 = smov (!%p705_p9, %s295_s22), 63  ;;  %s81_s6 = scalar_lea.vmem [#allocation4], %s1161_s10  ;;  %v338_v45 = vrot.slane %v120_v32, 7 }
  0x80   :  { %v182_v29 = vld [vmem:[%s181_s21] sm:$0x1]  ;;  %s1144_s19 = sld [smem:[#allocation14_spill]]  ;;  %s154_s28 = scalar_lea.vmem [#allocation4], %s1183_s18  ;;  %v210_v34 = vadd.f32 %v209_v27, %v201_v26 }
  0x81   :  { %v82_v31 = vld [vmem:[%s81_s6] sm:$0x1]  ;;  %s305_s26 = scalar_select %p304_p10, %s1055_s8, 0  ;;  %v183_v37 = vadd.f32 %v182_v29, %v174_v25 }
  0x82   :  { %v155_v33 = vld [vmem:[%s154_s28] sm:$0x1]  ;;  %s236_s30 = scalar_lea.vmem [#allocation4], %s1213_s15  ;;  %s244_s27 = scalar_lea.vmem [#allocation4], %s1215_s2  ;;  %v83_v41 = vadd.f32 %v82_v31, %v74_v30 }
  0x83   :  { %v237_v35 = vld [vmem:[%s236_s30] sm:$0x1]  ;;  %p711_p11 = scmp.lt.s32.totalorder %s1055_s8, 63  ;;  %s217_s17 = scalar_lea.vmem [#allocation4], %s1207_s7  ;;  %v156_v39 = vadd.f32 %v155_v33, %v147_v28 }
  0x84   :  { %v245_v36 = vld [vmem:[%s244_s27] sm:$0x1]  ;;  %s1145_s10 = sld [smem:[#allocation16_spill]]  ;;  %p312_p12 = scmp.gt.s32.totalorder %s1072_s11, 0  ;;  %v359_v54 = vsel %vm358_vm1, %v83_v41, %v338_v45 }
  0x85   :  { %v218_v38 = vld [vmem:[%s217_s17] sm:$0x1]  ;;  %p717_p13 = scmp.lt.s32.totalorder %s1072_s11, 63  ;;  %s1146_s18 = sld [smem:[#allocation15_spill]]  ;;  %v246_v42 = vadd.f32 %v245_v36, %v237_v35  ;;  %v341_v51 = vrot.slane %v156_v39, 6 }
  0x86   :  { %s190_s25 = scalar_lea.vmem [#allocation4], %s1144_s19  ;;  %s1233_s26 = smov (!%p711_p11, %s305_s26), 63  ;;  %v219_v46 = vadd.f32 %v218_v38, %v210_v34 }
  0x87   :  { %v191_v40 = vld [vmem:[%s190_s25] sm:$0x1]  ;;  %s272_s2 = scalar_lea.vmem [#allocation4], %s1225_s0  ;;  %s280_s15 = scalar_lea.vmem [#allocation4], %s1227_s14  ;;  %v361_v59 = vsel %vm360_vm2, %v359_v54, %v341_v51 }
  0x88   :  { %v273_v43 = vld [vmem:[%s272_s2] sm:$0x1]  ;;  %s313_s29 = scalar_select %p312_p12, %s1072_s11, 0  ;;  %v192_v48 = vadd.f32 %v191_v40, %v183_v37 }
  0x89   :  { %v281_v44 = vld [vmem:[%s280_s15] sm:$0x1]  ;;  %s1147_s5 = sld [smem:[#allocation17_spill]]  ;;  %s289_s0 = scalar_lea.vmem [#allocation4], %s1229_s1 }
  0x8a   :  { %s253_s7 = scalar_lea.vmem [#allocation4], %s1145_s10  ;;  %s1108_s8 = sld [smem:[#allocation3 + $0x1e]]  ;;  %v282_v50 = vadd.f32 %v281_v44, %v273_v43  ;;  %v290_v53 = vld [vmem:[%s289_s0] sm:$0x1]  ;;  %v344_v57 = vrot.slane %v192_v48, 5 }
  0x8b   :  { %v254_v47 = vld [vmem:[%s253_s7] sm:$0x1]  ;;  %s226_s3 = scalar_lea.vmem [#allocation4], %s1146_s18  ;;  %s1235_s29 = smov (!%p717_p13, %s313_s29), 63 }
  0x8c   :  { %v227_v49 = vld [vmem:[%s226_s3] sm:$0x1]  ;;  %s1113_s14 = sld [smem:[#allocation3 + $0x1f]]  ;;  %v255_v52 = vadd.f32 %v254_v47, %v246_v42  ;;  %v291_v58 = vadd.f32 %v290_v53, %v282_v50  ;;  %s298_s1 = scalar_lea.vmem [#allocation4], %s1231_s22  ;;  %v363_v1 = vsel %vm362_vm3, %v361_v59, %v344_v57 }
  0x8d   :  { %v228_v55 = vadd.f32 %v227_v49, %v219_v46  ;;  %v299_v61 = vld [vmem:[%s298_s1] sm:$0x1]  ;;  %s308_s11 = scalar_lea.vmem [#allocation4], %s1233_s26  ;;  %s316_s13 = scalar_lea.vmem [#allocation4], %s1235_s29 }
  0x8e   :  { %v309_v62 = vld [vmem:[%s308_s11] sm:$0x1]  ;;  %v300_v2 = vadd.f32 %v299_v61, %v291_v58  ;;  %s1148_s23 = sld [smem:[#allocation18_spill]]  ;;  %s943_s24 = smov [#allocation9]  }
  0x8f   :  { %s262_s4 = scalar_lea.vmem [#allocation4], %s1147_s5  ;;  %v317_v63 = vld [vmem:[%s316_s13] sm:$0x1]  ;;  %v347_v0 = vrot.slane %v228_v55, 4  ;;  %s501_s21 = sshll.u32 %s943_s24, 4  ;;  %s502_s21 = int_to_ptr.vmem [resolvable:$true] %s501_s21 }
  0x90   :  { %v263_v56 = vld [vmem:[%s262_s4] sm:$0x1]  ;;  %p321_p0 = scmp.gt.s32.totalorder %s1108_s8, 0  ;;  %p723_p1 = scmp.lt.s32.totalorder %s1108_s8, 63  ;;  %v318_v3 = vadd.f32 %v317_v63, %v309_v62  ;;  %v353_v8 = vrot.slane %v300_v2, 2 }
  0x91   :  { %v264_v60 = vadd.f32 %v263_v56, %v255_v52  ;;  %v365_v5 = vsel %vm364_vm4, %v363_v1, %v347_v0  ;;  %s906_s6 = scalar_lea.vmem %s502_s21, 128  ;;  %p911_p5 = scmp.lt.s32.totalorder %s502_s21, %s502_s21 }
  0x92   :  { %s322_s16 = scalar_select %p321_p0, %s1108_s8, 0 }
  0x93   :  { %p330_p2 = scmp.gt.s32.totalorder %s1113_s14, 0  ;;  %p729_p3 = scmp.lt.s32.totalorder %s1113_s14, 63  ;;  %v350_v4 = vrot.slane %v264_v60, 3 }
  0x94   :  { %s1237_s16 = smov (!%p723_p1, %s322_s16), 63  ;;  %v734_v16 = vld [vmem:[%s1148_s23] ss:$0 sm:$0xff]  ;;  %p907_p4 = scmp.ne.s32.totalorder %s502_s21, %s906_s6 }
  0x95   :  { %s1239_s14 = smov (!%p330_p2, %s1113_s14), 0  ;;  %s325_s9 = scalar_lea.vmem [#allocation4], %s1237_s16  ;;  %v367_v9 = vsel %vm366_vm5, %v365_v5, %v350_v4 }
  0x96   :  { %v326_v6 = vld [vmem:[%s325_s9] sm:$0x1]  ;;  %s1241_s14 = smov (!%p729_p3, %s1239_s14), 63  ;;  %v369_v12 = vsel %vm368_vm6, %v367_v9, %v353_v8  ;;  %p912_p6 = scmp.lt.s32.totalorder %s906_s6, %s906_s6 }
  0x97   :  { %v327_v7 = vadd.f32 %v326_v6, %v318_v3  ;;  %s334_s12 = scalar_lea.vmem [#allocation4], %s1241_s14 }
  0x98   :  { %v335_v10 = vld [vmem:[%s334_s12] sm:$0x1]  ;;  %p913_p7 = por %p912_p6, %p911_p5 }
  0x99   :  { %v336_v11 = vadd.f32 %v335_v10, %v327_v7 }
  0x9a   :  { %p914_p8 = pnand %p913_p7, %p907_p4 }
  0x9b   :  { %v356_v13 = vrot.slane %v336_v11, 1 }
  0x9d   :  { %v371_v14 = vsel %vm370_vm7, %v369_v12, %v356_v13 }
  0x9e   :  { %v372_v15 = vpack.c.bf16 %v371_v14, %v371_v14 }
  0xa0   :  { %833 = vmatmul.mubr.bf16.vlgmr.msra.gmra.mxu0 %v372_v15 }
 0x160   :  { %v478_v17 = vpop.f32.mrf.mxu0 }
 0x161   :  { %v479_v18 = vadd.f32 %v734_v16, %v478_v17 }
 0x162   :  { %v834_v19 = vpop.f32.mrf.mxu0 }
 0x163   :  { %484 = vmax.xlane.f32.xlu0 %v479_v18 }
 0x164   :  { %v481_v20 = vpop.f32.mrf.mxu0 }
 0x166   :  { %v835_v21 = vpop.f32.mrf.mxu0 }
 0x1ec   :  { %v485_v22 = vpop.xlane.xlu0 %484 }
 0x1ed   :  { %v486_v23 = vsub.f32 %v479_v18, %v485_v22 }
 0x1ef   :  { %v487_v24 = vmul.f32 1.442695, %v486_v23 }
 0x1f1   :  { %854 = vpow2.f32 %v487_v24 }
 0x1fe   :  { %v855_v25 = vpop.eup %854 }
 0x1ff   :  { %489 = vadd.xlane.f32.xlu0 %v855_v25 }
 0x288   :  { %v490_v26 = vpop.xlane.xlu0 %489 }
 0x289   :  { %856 = vlog2.f32 %v490_v26 }
 0x296   :  { %v857_v27 = vpop.eup %856 }
 0x297   :  { %v492_v28 = vmul.f32 0.6931472, %v857_v27 }
 0x299   :  { %v493_v29 = vsub.f32 %v486_v23, %v492_v28 }
 0x29b   :  { %494 = vst [vmem:[#allocation9] sm:$0xff] %v493_v29 }
 0x29c   :  { %917 = shalt.err (!%p914_p8)
}
 0x29d   :  { %s1149_s26 = sld [smem:[#allocation19_spill]] }
 0x2a3   :  { %504 = dma.vmem_to_hbm [thread:$0]  %s502_s21, 128, %s1149_s26, [#allocation6]  }
 0x2a4   :  { %932 = dma.done.wait [#allocation6], 128  }
 0x2a5   :  { %933 = vsyncadd [#allocation6], 4294967168 }
 0x2a6   :  { %508 = vsyncpa [#allocation5], 1 }
 0x2a7   :  { %509 = vsyncpa [#allocation8], 1 }
 0x2a8   :  { %510 = vsyncpa [#allocation6], 1 }

</bundles_post_ra>
